<compile_context>
chip_gen: v7x
topology: tpu7x:2x2x1
jax: 0.10.0
libtpu: 0.0.40
codegen_flags: <defaults>
</compile_context>

<pallas_src>
import functools

import jax
import jax.numpy as jnp
import numpy as np
from jax.experimental import pallas as pl
from jax.experimental.pallas import tpu as pltpu


def _round_up(x, m):
    return -(-x // m) * m


# Minimum per-grid-step rows worth splitting across the two v7x TensorCores.
_MIN_TILE_PER_CORE = 256


def _choose_batch_tile(batch, max_tile):
    """Pick a batch tile: big (overhead-amortizing) but never over-padding a
    tiny batch, and guaranteeing >= 2 grid steps when there is enough work
    (v7x megacore; harmless on the single-TC v5e/v6e)."""
    b8 = max(8, _round_up(batch, 8))
    if b8 <= max_tile:
        if b8 >= 2 * _MIN_TILE_PER_CORE:
            return _round_up(pl.cdiv(b8, 2), 8)   # 2 grid steps
        return b8                                  # single small step
    return max_tile                                # grid >= 2 automatically


def prepare_gru_params(wi_t, wh_t, bi, bh, *, input_channels, hidden_channels,
                       param_dtype=jnp.bfloat16):
    """Build the fused (C, 4H) weight and (1, 4H) bias ONCE per parameter set.

    wi_t: (IN, 3H) = W_ih^T (torch GRUCell weight, pre-transposed), cols [r|u|n]
    wh_t: (H,  3H) = W_hh^T
    bi, bh: (3H,) or (1, 3H)

    Column layout of the fused weight / bias (H columns each):
        [ r (full depth) | u (full depth) | gi_n (x rows only) | gh_n (h rows only) ]
    """
    IN, H = input_channels, hidden_channels
    C = IN + H
    wi = jnp.reshape(wi_t, (IN, 3 * H)).astype(jnp.float32)
    wh = jnp.reshape(wh_t, (H, 3 * H)).astype(jnp.float32)
    bi = jnp.reshape(bi, (3 * H,)).astype(jnp.float32)
    bh = jnp.reshape(bh, (3 * H,)).astype(jnp.float32)

    w = jnp.zeros((C, 4 * H), jnp.float32)
    # r and u: stack input/hidden weights full depth -> matmul yields gi+gh.
    w = w.at[:IN, 0:H].set(wi[:, 0:H])
    w = w.at[IN:, 0:H].set(wh[:, 0:H])
    w = w.at[:IN, H:2 * H].set(wi[:, H:2 * H])
    w = w.at[IN:, H:2 * H].set(wh[:, H:2 * H])
    # n: keep the input and hidden halves separate (r only gates gh_n).
    w = w.at[:IN, 2 * H:3 * H].set(wi[:, 2 * H:3 * H])
    w = w.at[IN:, 3 * H:4 * H].set(wh[:, 2 * H:3 * H])

    b = jnp.concatenate([
        bi[0:H] + bh[0:H],          # r bias (folded)
        bi[H:2 * H] + bh[H:2 * H],  # u bias (folded)
        bi[2 * H:3 * H],            # gi_n bias
        bh[2 * H:3 * H],            # gh_n bias
    ]).reshape(1, 4 * H)

    return w.astype(param_dtype), b.astype(jnp.float32)


def _gru_cell_kernel(z_ref, w_ref, b_ref, h_ref, *, input_channels,
                     hidden_channels):
    """h_new = GRUCell(x, clamp(h, -1, 1)) for one batch tile."""
    IN = input_channels
    H = hidden_channels

    z = z_ref[...]                                   # (TB, C) f32
    TB, C = z.shape

    # [x | clamp(h, -1, 1)] without a concatenate: single masked select.
    col = jax.lax.broadcasted_iota(jnp.int32, (TB, C), 1)
    zc = jnp.where(col < IN, z, jnp.clip(z, -1.0, 1.0))

    # One dense (TB, C) @ (C, 4H) MXU contraction (bf16 operands, f32 acc):
    #   g = [ gi_r+gh_r | gi_u+gh_u | gi_n | gh_n ]   (TB, 4H = 128 lanes)
    g = jnp.dot(zc.astype(w_ref.dtype), w_ref[...],
                preferred_element_type=jnp.float32) + b_ref[...]

    # Sigmoid via tanh: one EUP transcendental per gate instead of exp+recip.
    r = 0.5 * (1.0 + jnp.tanh(0.5 * g[:, 0:H]))
    u = 0.5 * (1.0 + jnp.tanh(0.5 * g[:, H:2 * H]))
    n = jnp.tanh(g[:, 2 * H:3 * H] + r * g[:, 3 * H:4 * H])

    h_prev = zc[:, IN:]                              # already clamped, f32
    h_ref[...] = (1.0 - u) * n + u * h_prev          # (TB, H) store


def continuous_rnn_converter(z, w_fused, b_fused, out_base, *,
                             input_channels, hidden_channels,
                             batch_tile=2048):
    """ContinuousRNNConverter.forward with a GRUCell `model`.

    z:        (..., IN + H)
    w_fused:  (IN + H, 4H)  from prepare_gru_params (bf16)
    b_fused:  (1, 4H)       from prepare_gru_params (f32)
    out_base: (IN + H, IN)  (the registered buffer)
    returns:  (..., IN + H, IN)
    """
    IN, H = input_channels, hidden_channels
    C = IN + H
    assert z.shape[-1] == C
    assert w_fused.shape == (C, 4 * H)
    batch_shape = z.shape[:-1]

    z2 = z.reshape(-1, C).astype(jnp.float32)
    B = z2.shape[0]

    tile = _choose_batch_tile(B, batch_tile)
    Bp = _round_up(B, tile)
    if Bp != B:
        z2 = jnp.pad(z2, ((0, Bp - B), (0, 0)))     # zero pad; sliced off below

    kernel = functools.partial(_gru_cell_kernel,
                               input_channels=IN, hidden_channels=H)

    h_new = pl.pallas_call(
        kernel,
        out_shape=jax.ShapeDtypeStruct((Bp, H), jnp.float32),
        grid_spec=pltpu.PrefetchScalarGridSpec(
            num_scalar_prefetch=0,
            grid=(Bp // tile,),
            in_specs=[
                pl.BlockSpec((tile, C), lambda i: (i, 0)),       # z (batch-tiled)
                pl.BlockSpec((C, 4 * H), lambda i: (0, 0)),      # fused W (resident)
                pl.BlockSpec((1, 4 * H), lambda i: (0, 0)),      # fused bias
            ],
            out_specs=pl.BlockSpec((tile, H), lambda i: (i, 0)),
        ),
        compiler_params=pltpu.CompilerParams(
            dimension_semantics=("parallel",)),
    )(z2, w_fused, b_fused)

    h_new = h_new[:B]                                # drop batch padding

    # Output assembly (constant-dominated, memory-bound, minor dim = IN): plain
    # JAX, matching the PyTorch forward for ANY out_base buffer.
    # TODO(synk): fuse the downstream CDE contraction to avoid this tensor.
    out = jnp.broadcast_to(out_base.astype(jnp.float32)[None], (B, C, IN))
    out = out.at[:, IN:, 0].set(h_new)
    return out.reshape(*batch_shape, C, IN)


def _reference(z, wi_t, wh_t, bi, bh, out_base, *, input_channels):
    IN = input_channels
    x = z[..., :IN]
    h = jnp.clip(z[..., IN:], -1.0, 1.0)
    H = h.shape[-1]
    gi = x @ wi_t + jnp.reshape(bi, (3 * H,))
    gh = h @ wh_t + jnp.reshape(bh, (3 * H,))
    r = jax.nn.sigmoid(gi[..., :H] + gh[..., :H])
    u = jax.nn.sigmoid(gi[..., H:2 * H] + gh[..., H:2 * H])
    n = jnp.tanh(gi[..., 2 * H:] + r * gh[..., 2 * H:])
    h_new = (1.0 - u) * n + u * h
    out = jnp.broadcast_to(out_base[None], (z.shape[0],) + out_base.shape)
    out = out.at[:, IN:, 0].set(h_new)
    return out


if __name__ == "__main__":
    IN = 4      # input_channels
    H = 32      # hidden_channels
    C = IN + H
    B = 8       # batch

    key = jax.random.PRNGKey(0)
    kz, kwi, kwh, kbi, kbh = jax.random.split(key, 5)

    # Deterministic synthetic GRU-cell parameters (torch.nn.GRUCell shapes,
    # stored pre-transposed for x @ W^T matmuls).
    z = jax.random.normal(kz, (B, C), dtype=jnp.float32)
    wi_t = jax.random.normal(kwi, (IN, 3 * H), dtype=jnp.float32) * 0.1
    wh_t = jax.random.normal(kwh, (H, 3 * H), dtype=jnp.float32) * 0.1
    bi = jax.random.normal(kbi, (3 * H,), dtype=jnp.float32) * 0.1
    bh = jax.random.normal(kbh, (3 * H,), dtype=jnp.float32) * 0.1

    # out_base: (IN + H, IN) with identity in the top IN rows (as in PyTorch).
    out_base = jnp.zeros((C, IN), dtype=jnp.float32)
    out_base = out_base.at[jnp.arange(IN), jnp.arange(IN)].set(1.0)

    # Hoisted once per parameter set (the converter is the ODE vector field
    # and is called many times per solver step).
    w_fused, b_fused = prepare_gru_params(
        wi_t, wh_t, bi, bh, input_channels=IN, hidden_channels=H)

    out = continuous_rnn_converter(
        z, w_fused, b_fused, out_base,
        input_channels=IN, hidden_channels=H, batch_tile=2048)
    out = jax.block_until_ready(out)

    ref = _reference(z, wi_t, wh_t, bi, bh, out_base, input_channels=IN)
    # bf16 MXU operands (h clamped to [-1,1], bounded gates) -> loose-ish atol.
    np.testing.assert_allclose(np.asarray(out), np.asarray(ref),
                               rtol=2e-2, atol=2e-2)
    assert out.shape == (B, C, IN)
    print("KERNEL_OK")
</pallas_src>

<mosaic_0001>
module attributes {stable_mosaic.version = 11 : i64} {
  func.func @_gru_cell_kernel(%arg0: i32, %arg1: memref<8x36xf32, #tpu.memory_space<vmem>>, %arg2: memref<36x128xbf16, #tpu.memory_space<vmem>>, %arg3: memref<1x128xf32, #tpu.memory_space<vmem>>, %arg4: memref<8x32xf32, #tpu.memory_space<vmem>>) attributes {dimension_semantics = [#tpu.dimension_semantics<parallel>], iteration_bounds = array<i64: 1>, scalar_prefetch = 0 : i64, scratch_operands = 0 : i64, tpu.core_type = #tpu.core_type<tc>, window_params = [{transform_indices = @transform_0, window_bounds = array<i64: 8, 36>}, {pipeline_mode = #tpu.pipeline_mode<synchronous>, transform_indices = @transform_1, window_bounds = array<i64: 36, 128>}, {pipeline_mode = #tpu.pipeline_mode<synchronous>, transform_indices = @transform_2, window_bounds = array<i64: 1, 128>}, {transform_indices = @transform_3, window_bounds = array<i64: 8, 32>}]} {
    %c0 = arith.constant 0 : index
    %c0_0 = arith.constant 0 : index
    %0 = vector.load %arg1[%c0, %c0_0] : memref<8x36xf32, #tpu.memory_space<vmem>>, vector<8x36xf32>
    %1 = tpu.iota {dimensions = array<i32: 1>} : vector<8x36xi32>
    %c4_i32 = arith.constant 4 : i32
    %2 = vector.broadcast %c4_i32 : i32 to vector<8x36xi32>
    %3 = arith.cmpi slt, %1, %2 : vector<8x36xi32>
    %cst = arith.constant -1.000000e+00 : f32
    %cst_1 = arith.constant 1.000000e+00 : f32
    %4 = vector.broadcast %cst : f32 to vector<8x36xf32>
    %5 = arith.maximumf %4, %0 : vector<8x36xf32>
    %6 = vector.broadcast %cst_1 : f32 to vector<8x36xf32>
    %7 = arith.minimumf %6, %5 : vector<8x36xf32>
    %8 = arith.select %3, %0, %7 : vector<8x36xi1>, vector<8x36xf32>
    %9 = arith.truncf %8 : vector<8x36xf32> to vector<8x36xbf16>
    %c0_2 = arith.constant 0 : index
    %c0_3 = arith.constant 0 : index
    %10 = vector.load %arg2[%c0_2, %c0_3] : memref<36x128xbf16, #tpu.memory_space<vmem>>, vector<36x128xbf16>
    %cst_4 = arith.constant dense<0.000000e+00> : vector<8x128xf32>
    %11 = tpu.matmul %9, %10, %cst_4 {dimension_numbers = #tpu.dot_dimension_numbers<[1], [0], [0], [1], [0, 0, 1, 1], [], []>} : vector<8x36xbf16>, vector<36x128xbf16>, vector<8x128xf32> -> vector<8x128xf32>
    %c0_5 = arith.constant 0 : index
    %c0_6 = arith.constant 0 : index
    %12 = vector.load %arg3[%c0_5, %c0_6] : memref<1x128xf32, #tpu.memory_space<vmem>>, vector<1x128xf32>
    %13 = vector.broadcast %12 : vector<1x128xf32> to vector<8x128xf32>
    %14 = arith.addf %11, %13 : vector<8x128xf32>
    %15 = vector.extract_strided_slice %14 {offsets = [0, 0], sizes = [8, 32], strides = [1, 1]} : vector<8x128xf32> to vector<8x32xf32>
    %cst_7 = arith.constant 5.000000e-01 : f32
    %16 = vector.broadcast %cst_7 : f32 to vector<8x32xf32>
    %17 = arith.mulf %16, %15 : vector<8x32xf32>
    %18 = math.tanh %17 : vector<8x32xf32>
    %cst_8 = arith.constant 1.000000e+00 : f32
    %19 = vector.broadcast %cst_8 : f32 to vector<8x32xf32>
    %20 = arith.addf %19, %18 : vector<8x32xf32>
    %cst_9 = arith.constant 5.000000e-01 : f32
    %21 = vector.broadcast %cst_9 : f32 to vector<8x32xf32>
    %22 = arith.mulf %21, %20 : vector<8x32xf32>
    %23 = vector.extract_strided_slice %14 {offsets = [0, 32], sizes = [8, 32], strides = [1, 1]} : vector<8x128xf32> to vector<8x32xf32>
    %cst_10 = arith.constant 5.000000e-01 : f32
    %24 = vector.broadcast %cst_10 : f32 to vector<8x32xf32>
    %25 = arith.mulf %24, %23 : vector<8x32xf32>
    %26 = math.tanh %25 : vector<8x32xf32>
    %cst_11 = arith.constant 1.000000e+00 : f32
    %27 = vector.broadcast %cst_11 : f32 to vector<8x32xf32>
    %28 = arith.addf %27, %26 : vector<8x32xf32>
    %cst_12 = arith.constant 5.000000e-01 : f32
    %29 = vector.broadcast %cst_12 : f32 to vector<8x32xf32>
    %30 = arith.mulf %29, %28 : vector<8x32xf32>
    %31 = vector.extract_strided_slice %14 {offsets = [0, 64], sizes = [8, 32], strides = [1, 1]} : vector<8x128xf32> to vector<8x32xf32>
    %32 = vector.extract_strided_slice %14 {offsets = [0, 96], sizes = [8, 32], strides = [1, 1]} : vector<8x128xf32> to vector<8x32xf32>
    %33 = arith.mulf %22, %32 : vector<8x32xf32>
    %34 = arith.addf %31, %33 : vector<8x32xf32>
    %35 = math.tanh %34 : vector<8x32xf32>
    %36 = vector.extract_strided_slice %8 {offsets = [0, 4], sizes = [8, 32], strides = [1, 1]} : vector<8x36xf32> to vector<8x32xf32>
    %cst_13 = arith.constant 1.000000e+00 : f32
    %37 = vector.broadcast %cst_13 : f32 to vector<8x32xf32>
    %38 = arith.subf %37, %30 : vector<8x32xf32>
    %39 = arith.mulf %38, %35 : vector<8x32xf32>
    %40 = arith.mulf %30, %36 : vector<8x32xf32>
    %41 = arith.addf %39, %40 : vector<8x32xf32>
    %c0_14 = arith.constant 0 : index
    %c0_15 = arith.constant 0 : index
    %42 = vector.load %arg4[%c0_14, %c0_15] : memref<8x32xf32, #tpu.memory_space<vmem>>, vector<8x32xf32>
    tpu.vector_store %arg4[%c0_14, %c0_15], %41 {strides = array<i32>} : memref<8x32xf32, #tpu.memory_space<vmem>>, vector<8x32xf32>,
    return
  }
  func.func @transform_0(%arg0: i32) -> (i32, i32) {
    %c0_i32 = arith.constant 0 : i32
    %c0_i32_0 = arith.constant 0 : i32
    return %arg0, %c0_i32 : i32, i32
  }
  func.func @transform_1(%arg0: i32) -> (i32, i32) {
    %c0_i32 = arith.constant 0 : i32
    %c0_i32_0 = arith.constant 0 : i32
    %c0_i32_1 = arith.constant 0 : i32
    return %c0_i32, %c0_i32_0 : i32, i32
  }
  func.func @transform_2(%arg0: i32) -> (i32, i32) {
    %c0_i32 = arith.constant 0 : i32
    %c0_i32_0 = arith.constant 0 : i32
    %c0_i32_1 = arith.constant 0 : i32
    return %c0_i32, %c0_i32_0 : i32, i32
  }
  func.func @transform_3(%arg0: i32) -> (i32, i32) {
    %c0_i32 = arith.constant 0 : i32
    %c0_i32_0 = arith.constant 0 : i32
    return %arg0, %c0_i32 : i32, i32
  }
}

</mosaic_0001>

<bundles_post_ra>
// kernel: tpu_custom_call.1
= control target key start
LH: loop header
LB: loop body
LE: loop exit
PB: predicated region body
PF: predicated region fallthrough
CT: control target
= control target key end

     0   :  { %8 = vsyncpa [#allocation3], 0  ;;  %s362_s0 = inlined_call_operand.hbm [shape: f32[8,36], index: 0, kind: input, shape index: {}]   ;;  %s363_s1 = inlined_call_operand.hbm [shape: bf16[36,128], index: 1, kind: input, shape index: {}]   ;;  %s364_s2 = inlined_call_operand.vmem [shape: f32[1,128], index: 2, kind: input, shape index: {}]   ;;  %s365_s3 = inlined_call_operand.hbm [shape: f32[8,32], index: 3, kind: output, shape index: {}]  }
   0x1   :  { %9 = vsyncpa [#allocation6], 0 }
   0x2   :  { %10 = vsyncpa [#allocation4], 0  ;;  %s283_s12 = smov [#allocation2]   ;;  %s284_s14 = smov [#allocation5]  }
   0x3   :  { %s17_s13 = sshll.u32 %s283_s12, 4  ;;  %s26_s15 = sshll.u32 %s284_s14, 4  ;;  %s18_s13 = int_to_ptr.vmem [resolvable:$true] %s17_s13  ;;  %s313_s15 = int_to_ptr.vmem [resolvable:$true] %s26_s15 }
   0x4   :  { %s211_s18 = scalar_lea.hbm %s362_s0, 128 }
   0x5   :  { %p212_p0 = scmp.ne.s32.totalorder %s362_s0, %s211_s18  ;;  %p215_p1 = scmp.lt.u32.totalorder %s211_s18, %s362_s0 }
   0x7   :  { %p217_p2 = pnand %p215_p1, %p212_p0 }
   0x9   :  { %220 = shalt.err (!%p217_p2)
}
   0xa   :  { %s221_s23 = scalar_lea.vmem %s18_s13, 128  ;;  %p226_p4 = scmp.lt.s32.totalorder %s18_s13, %s18_s13 }
   0xb   :  { %p222_p3 = scmp.ne.s32.totalorder %s18_s13, %s221_s23  ;;  %p227_p5 = scmp.lt.s32.totalorder %s221_s23, %s221_s23 }
   0xd   :  { %p228_p6 = por %p227_p5, %p226_p4 }
   0xf   :  { %p229_p7 = pnand %p228_p6, %p222_p3 }
  0x11   :  { %232 = shalt.err (!%p229_p7)
}
  0x12   :  { %20 = dma.hbm_to_vmem [thread:$0]  %s362_s0, 128, %s18_s13, [#allocation3]  }
  0x13   :  { %s233_s28 = scalar_lea.hbm %s363_s1, 320 }
  0x14   :  { %p234_p8 = scmp.ne.s32.totalorder %s363_s1, %s233_s28  ;;  %p237_p9 = scmp.lt.u32.totalorder %s233_s28, %s363_s1 }
  0x16   :  { %p239_p10 = pnand %p237_p9, %p234_p8 }
  0x18   :  { %242 = shalt.err (!%p239_p10)
}
  0x19   :  { %s243_s6 = scalar_lea.vmem %s313_s15, 320  ;;  %p248_p12 = scmp.lt.s32.totalorder %s313_s15, %s313_s15 }
  0x1a   :  { %p244_p11 = scmp.ne.s32.totalorder %s313_s15, %s243_s6  ;;  %p249_p13 = scmp.lt.s32.totalorder %s243_s6, %s243_s6 }
  0x1c   :  { %p250_p0 = por %p249_p13, %p248_p12 }
  0x1e   :  { %p251_p1 = pnand %p250_p0, %p244_p11 }
  0x20   :  { %254 = shalt.err (!%p251_p1)
}
  0x21   :  { %s285_s0 = smov 64   ;;  %s286_s7 = smov 4  }
  0x22   :  { %32 = dma.hbm_to_vmem [thread:$0]  %s363_s1, 320, %s313_s15, [#allocation6], %s285_s0, %s285_s0, %s286_s7  }
  0x23   :  { %277 = dma.done.wait [#allocation3], 128  }
  0x24   :  { %278 = vsyncadd [#allocation3], 4294967168 }
  0x25   :  { %279 = dma.done.wait [#allocation6], 320  }
  0x26   :  { %280 = vsyncadd [#allocation6], 4294966976  ;;  %v287_v0 = vmov 0.0   ;;  %vm288_vm0 = vmmov 0   ;;  %v43_v1 = vlaneseq  ;;  %v204_v3 = vld [vmem:[#allocation5] sm:$0xff]   ;;  %v205_v4 = vld [vmem:[#allocation5 + $0x8] sm:$0xff]  }
  0x27   :  { %184 = vmatprep.subr.bf16.mxu0 %v287_v0  ;;  %190 = vmatprep.mubr.msk.bf16.mxu0 %vm288_vm0, %v287_v0  ;;  %v42_v5 = vld [vmem:[#allocation2] sm:$0xff]  ;;  %v206_v6 = vld [vmem:[#allocation5 + $0x10] ss:$0 sps:$4 sm:$0x33]   ;;  %vm81_vm2 = vcmask 1041408   ;;  %vm77_vm3 = vcmask 293888  }
  0x28   :  { %v44_v2 = vand.u32 127, %v43_v1  ;;  %185 = vmatpush3.bf16.msra.mxu0 %v204_v3  ;;  %v174_v7 = vclamps-f32 %v42_v5, 1.0  ;;  %v83_v9 = vsel %vm81_vm2, %v206_v6, 0  ;;  %v175_v11 = vld [vmem:[%s364_s2] ss:$0 sm:$0xff]  ;;  %s289_s11 = smov 32  }
  0x29   :  { %186 = vmatprep.subr.bf16.mxu0 %v287_v0  ;;  %s290_s2 = smov 96   ;;  %s291_s12 = smov 28   ;;  %vm156_vm4 = vcmask 261120  }
  0x2a   :  { %vm45_vm1 = vcmp.lt.s32.totalorder %v44_v2, 4  ;;  %s292_s13 = smov [#allocation7]  }
  0x2b   :  { %v48_v8 = vsel %vm45_vm1, %v42_v5, %v174_v7  ;;  %s164_s14 = sshll.u32 %s292_s13, 4  ;;  %s165_s14 = int_to_ptr.vmem [resolvable:$true] %s164_s14 }
  0x2c   :  { %187 = vmatpush3.bf16.msra.mxu0 %v205_v4  ;;  %v49_v10 = vpack.c.bf16 %v48_v8, %v48_v8  ;;  %s255_s15 = scalar_lea.vmem %s165_s14, 128  ;;  %p260_p3 = scmp.lt.s32.totalorder %s165_s14, %s165_s14 }
  0x2d   :  { %188 = vmatprep.subr.bf16.mxu0 %v287_v0  ;;  %p256_p2 = scmp.ne.s32.totalorder %s165_s14, %s255_s15  ;;  %p261_p4 = scmp.lt.s32.totalorder %s255_s15, %s255_s15 }
  0x2f   :  { %p262_p5 = por %p261_p4, %p260_p3 }
  0x30   :  { %189 = vmatpush3.bf16.msra.mxu0 %v83_v9 }
  0x31   :  { %p263_p6 = pnand %p262_p5, %p256_p2 }
  0x33   :  { %191 = vmatmul.mubr.msk.bf16.vlgmr.msra.gmra.mrb[0].mxu0 %vm77_vm3, %v49_v10 }
 0x106   :  { %v119_v12 = vpop.f32.mrb[0].mxu0 }
 0x107   :  { %v120_v13 = vadd.f32 %v175_v11, %v119_v12  ;;  %v192_v14 = vpop.f32.mrb[1].mxu0 }
 0x108   :  { %v122_v15 = vpop.f32.mrb[2].mxu0 }
 0x109   :  { %130 = vrot.lane.b32.xlu0 %v120_v13, %s289_s11  ;;  %v193_v16 = vpop.f32.mrb[3].mxu0  ;;  %v125_v17 = vmul.f32 0.5, %v120_v13 }
 0x10b   :  { %207 = vtanh.f32 %v125_v17 }
 0x115   :  { %v208_v18 = vpop.eup %207 }
 0x116   :  { %v127_v19 = vadd.f32 1.0, %v208_v18 }
 0x118   :  { %v128_v20 = vmul.f32 0.5, %v127_v19 }
 0x11a   :  { %v140_v27 = vsub.f32 1.0, %v128_v20 }
 0x17b   :  { %v131_v21 = vpop.permute.xlu0 %130 }
 0x17c   :  { %v133_v22 = vmul.f32 %v131_v21, %v128_v20 }
 0x17e   :  { %135 = vrot.lane.b32.xlu0 %v133_v22, %s285_s0 }
 0x1f0   :  { %v136_v23 = vpop.permute.xlu0 %135 }
 0x1f1   :  { %v138_v24 = vadd.f32 %v136_v23, %v120_v13 }
 0x1f3   :  { %209 = vtanh.f32 %v138_v24 }
 0x1fd   :  { %v210_v25 = vpop.eup %209 }
 0x1fe   :  { %142 = vrot.lane.b32.xlu1 %v210_v25, %s290_s2 }
 0x202   :  { %147 = vrot.lane.b32.xlu1 %v48_v8, %s291_s12 }
 0x270   :  { %v143_v26 = vpop.permute.xlu1 %142 }
 0x271   :  { %v145_v29 = vmul.f32 %v143_v26, %v140_v27 }
 0x274   :  { %v148_v28 = vpop.permute.xlu1 %147 }
 0x275   :  { %v150_v30 = vmul.f32 %v148_v28, %v128_v20 }
 0x277   :  { %v151_v31 = vadd.f32 %v150_v30, %v145_v29 }
 0x279   :  { %153 = vrot.lane.b32.xlu0 %v151_v31, %s290_s2 }
 0x2eb   :  { %v154_v32 = vpop.permute.xlu0 %153 }
 0x2ec   :  { %157 = vst.msk [vmem:[#allocation7] sm:$0xff] %vm156_vm4, %v154_v32 }
 0x2ed   :  { %266 = shalt.err (!%p263_p6)
}
 0x2ee   :  { %s267_s18 = scalar_lea.hbm %s365_s3, 128 }
 0x2ef   :  { %p268_p7 = scmp.ne.s32.totalorder %s365_s3, %s267_s18  ;;  %p271_p8 = scmp.lt.u32.totalorder %s267_s18, %s365_s3 }
 0x2f1   :  { %p273_p9 = pnand %p271_p8, %p268_p7 }
 0x2f3   :  { %276 = shalt.err (!%p273_p9)
}
 0x2f4   :  { %167 = dma.vmem_to_hbm [thread:$0]  %s165_s14, 128, %s365_s3, [#allocation4]  }
 0x2f5   :  { %281 = dma.done.wait [#allocation4], 128  }
 0x2f6   :  { %282 = vsyncadd [#allocation4], 4294967168 }
 0x2f7   :  { %171 = vsyncpa [#allocation3], 1 }
 0x2f8   :  { %172 = vsyncpa [#allocation6], 1 }
 0x2f9   :  { %173 = vsyncpa [#allocation4], 1 }

</bundles_post_ra>
